<compile_context>
chip_gen: v6e
topology: v6e:2x2x1
jax: 0.10.0
libtpu: 0.0.40
codegen_flags: <defaults>
</compile_context>

<pallas_src>
import numpy as np
import jax
import jax.numpy as jnp
from jax import lax
from jax.experimental import pallas as pl
from jax.experimental.pallas import tpu as pltpu


def _invariant_spec(block_shape, index_map):
    """BlockSpec for a grid-invariant operand; single-buffered when supported."""
    try:
        return pl.BlockSpec(block_shape, index_map, pipeline_mode=pl.Buffered(1))
    except (TypeError, AttributeError):
        return pl.BlockSpec(block_shape, index_map)


# --------------------------------------------------------------------------- #
# Pass 1: RMSNorm + QKV projection + rotary scaling, tiled over (B, row block) #
# --------------------------------------------------------------------------- #
def make_qkv_kernel(n_heads: int, kv_heads: int, eps: float):
    def kernel(x_ref, g_ref, cs_ref, wq_ref, wk_ref, wv_ref, q_ref, k_ref, v_ref):
        x = x_ref[0]                                           # (tn, D) f32
        ms = jnp.mean(x * x, axis=-1, keepdims=True)
        xn = (x * lax.rsqrt(ms + eps) * g_ref[...]).astype(jnp.bfloat16)

        cs = cs_ref[...]                                       # (tn, d_head) f32
        csq = jnp.concatenate([cs] * n_heads, axis=-1)         # (tn, D)
        csk = jnp.concatenate([cs] * kv_heads, axis=-1)        # (tn, kv_d)

        # bf16 MXU operands, f32 accumulation.  1/sqrt(d_head) is folded into Wq.
        q = jnp.dot(xn, wq_ref[...], preferred_element_type=jnp.float32) * csq
        k = jnp.dot(xn, wk_ref[...], preferred_element_type=jnp.float32) * csk
        v = jnp.dot(xn, wv_ref[...], preferred_element_type=jnp.float32)

        q_ref[0] = q.astype(jnp.bfloat16)
        k_ref[0] = k.astype(jnp.bfloat16)
        v_ref[0] = v.astype(jnp.bfloat16)
    return kernel


# --------------------------------------------------------------------------- #
# Pass 2: flash-style causal GQA attention + output projection + residual     #
# --------------------------------------------------------------------------- #
def make_attn_kernel(n_heads: int, kv_heads: int, d_head: int,
                     blk_q: int, blk_k: int):
    reps = n_heads // kv_heads
    a = d_head

    def kernel(x_ref, q_ref, k_ref, v_ref, wo_ref, o_ref, m_sc, l_sc, acc_sc):
        qi = pl.program_id(1)
        ki = pl.program_id(2)
        q_start = qi * blk_q
        k_start = ki * blk_k

        @pl.when(ki == 0)
        def _():
            m_sc[...] = jnp.full_like(m_sc, -jnp.inf)
            l_sc[...] = jnp.zeros_like(l_sc)
            acc_sc[...] = jnp.zeros_like(acc_sc)

        # Causal block skip: KV blocks strictly above the diagonal contribute
        # nothing -- skip their score / PV matmuls entirely.
        # TODO(synk): use a scalar-prefetch kv schedule to also skip the DMA
        # (not just the compute) of fully-masked KV blocks.
        @pl.when(k_start <= q_start + (blk_q - 1))
        def _():
            q = q_ref[0]                                       # (blk_q, D)   bf16
            k = k_ref[0]                                       # (blk_k, kv_d) bf16
            v = v_ref[0]

            # GQA regroup (torch .repeat semantics: q head h -> kv head h % kv):
            # q -> (kv_heads, reps*blk_q, a); K/V stay un-replicated.
            # TODO(synk): for production d_head (multiple of 128) replace the
            # lane-slice stack with a single pltpu.einshape relayout.
            qg = jnp.stack([
                jnp.concatenate(
                    [q[:, (r * kv_heads + g) * a:(r * kv_heads + g + 1) * a]
                     for r in range(reps)], axis=0)
                for g in range(kv_heads)], axis=0)             # (G, R*blk_q, a)
            kg = jnp.stack([k[:, g * a:(g + 1) * a] for g in range(kv_heads)],
                           axis=0)                             # (G, blk_k, a)
            vg = jnp.stack([v[:, g * a:(g + 1) * a] for g in range(kv_heads)],
                           axis=0)                             # (G, blk_k, a)

            # Scores: reps folded into M -> big-M MXU passes, no K replication.
            s = jnp.einsum('gMa,gma->gMm', qg, kg,
                           preferred_element_type=jnp.float32)  # (G, R*blk_q, blk_k)

            # Per-tile causal mask (pure causal: diagonal is always unmasked,
            # so no fully-masked rows / no 0/0 NaN risk).
            rows = lax.broadcasted_iota(jnp.int32, (reps * blk_q, blk_k), 0)
            cols = lax.broadcasted_iota(jnp.int32, (reps * blk_q, blk_k), 1)
            q_pos = q_start + (rows % blk_q)
            k_pos = k_start + cols
            s = jnp.where((k_pos <= q_pos)[None], s, -jnp.inf)

            # Online softmax update; p stays UNnormalized (normalize after PV).
            m_prev = m_sc[...]
            m_new = jnp.maximum(m_prev, jnp.max(s, axis=-1, keepdims=True))
            alpha = jnp.exp(m_prev - m_new)
            p = jnp.exp(s - m_new)
            l_sc[...] = alpha * l_sc[...] + jnp.sum(p, axis=-1, keepdims=True)
            acc_sc[...] = alpha * acc_sc[...] + jnp.einsum(
                'gMm,gma->gMa', p.astype(jnp.bfloat16), vg,
                preferred_element_type=jnp.float32)
            m_sc[...] = m_new

        @pl.when(ki == pl.num_programs(2) - 1)
        def _():
            # Post-PV normalization (approx reciprocal on the EUP slot; adds a
            # tiny softmax-normalization error, covered by the 2e-2 tolerance).
            inv_l = pl.reciprocal(l_sc[...], approx=True)
            accn = (acc_sc[...] * inv_l).astype(jnp.bfloat16)  # (G, R*blk_q, a)
            # Re-pack heads along lanes to a lane-dense (blk_q, D) slab so the
            # head sum is fused into ONE (blk_q,D)@(D,D) MXU pass -- no
            # (H, n, D) intermediate, no leading-axis reduction.
            pieces = [
                accn[h % kv_heads,
                     (h // kv_heads) * blk_q:(h // kv_heads + 1) * blk_q, :]
                for h in range(n_heads)
            ]
            o_cat = jnp.concatenate(pieces, axis=-1)           # (blk_q, D) bf16
            o = jnp.dot(o_cat, wo_ref[...],
                        preferred_element_type=jnp.float32)    # (blk_q, D) f32
            o_ref[0] = (x_ref[0] + o).astype(o_ref.dtype)      # residual
    return kernel


def transformer_attention(x, g, wq_t, wk_t, wv_t, wo_t, cos, sin,
                          n_heads: int, kv_heads: int,
                          block_q: int = 256, block_kv: int = 256,
                          block_rows: int = 256):
    B, N, D = x.shape
    a = D // n_heads
    kv_d = a * kv_heads
    reps = n_heads // kv_heads
    eps = float(np.finfo(np.float32).eps)   # matches torch nn.RMSNorm default eps

    # q*cos + q*sin == q*(cos+sin): single (N, d_head) factor shared by q and k.
    cs = (cos + sin).astype(jnp.float32)

    # bf16 at the MXU (halves weight DMA/VMEM); 1/sqrt(d_head) folded into Wq.
    wq_b = (wq_t * jnp.float32(1.0 / np.sqrt(a))).astype(jnp.bfloat16)
    wk_b = wk_t.astype(jnp.bfloat16)
    wv_b = wv_t.astype(jnp.bfloat16)
    wo_b = wo_t.astype(jnp.bfloat16)

    # Tile sizes: 256-multiples for large N (v6e/v7x MXU fill), whole-N for toys.
    tn = N if N <= block_rows else block_rows
    bq = N if N <= block_q else block_q
    bk = N if N <= block_kv else block_kv
    assert N % tn == 0 and N % bq == 0 and N % bk == 0, \
        "sequence length must be divisible by the tile sizes"
    # TODO(synk): pad / mask remainder tiles for N not divisible by the blocks.

    vmem_limit = 64 * 1024 * 1024   # valid on v7x (64 MiB), > default scoped limit

    # ---- pass 1: RMSNorm + QKV projection + rotary factors -------------------
    q, k, v = pl.pallas_call(
        make_qkv_kernel(n_heads, kv_heads, eps),
        out_shape=(jax.ShapeDtypeStruct((B, N, D), jnp.bfloat16),
                   jax.ShapeDtypeStruct((B, N, kv_d), jnp.bfloat16),
                   jax.ShapeDtypeStruct((B, N, kv_d), jnp.bfloat16)),
        grid_spec=pltpu.PrefetchScalarGridSpec(
            num_scalar_prefetch=0,
            grid=(B, N // tn),
            in_specs=[
                pl.BlockSpec((1, tn, D), lambda b, i: (b, i, 0)),      # x
                _invariant_spec((1, D), lambda b, i: (0, 0)),          # RMSNorm g
                pl.BlockSpec((tn, a), lambda b, i: (i, 0)),            # cos+sin
                _invariant_spec((D, D), lambda b, i: (0, 0)),          # Wq^T/sqrt(a)
                _invariant_spec((D, kv_d), lambda b, i: (0, 0)),       # Wk^T
                _invariant_spec((D, kv_d), lambda b, i: (0, 0)),       # Wv^T
            ],
            out_specs=[
                pl.BlockSpec((1, tn, D), lambda b, i: (b, i, 0)),
                pl.BlockSpec((1, tn, kv_d), lambda b, i: (b, i, 0)),
                pl.BlockSpec((1, tn, kv_d), lambda b, i: (b, i, 0)),
            ],
        ),
        compiler_params=pltpu.CompilerParams(
            dimension_semantics=("parallel", "parallel"),
            vmem_limit_bytes=vmem_limit),
    )(x, g, cs, wq_b, wk_b, wv_b)

    # ---- pass 2: flash-style causal GQA attention + out proj + residual ------
    out = pl.pallas_call(
        make_attn_kernel(n_heads, kv_heads, a, bq, bk),
        out_shape=jax.ShapeDtypeStruct((B, N, D), x.dtype),
        grid_spec=pltpu.PrefetchScalarGridSpec(
            num_scalar_prefetch=0,
            grid=(B, N // bq, N // bk),
            in_specs=[
                pl.BlockSpec((1, bq, D), lambda b, qi, ki: (b, qi, 0)),     # x (resid)
                pl.BlockSpec((1, bq, D), lambda b, qi, ki: (b, qi, 0)),     # q
                pl.BlockSpec((1, bk, kv_d), lambda b, qi, ki: (b, ki, 0)),  # k
                pl.BlockSpec((1, bk, kv_d), lambda b, qi, ki: (b, ki, 0)),  # v
                _invariant_spec((D, D), lambda b, qi, ki: (0, 0)),          # Wo^T
            ],
            out_specs=pl.BlockSpec((1, bq, D), lambda b, qi, ki: (b, qi, 0)),
            scratch_shapes=[
                pltpu.VMEM((kv_heads, reps * bq, 1), jnp.float32),   # running max
                pltpu.VMEM((kv_heads, reps * bq, 1), jnp.float32),   # running sum
                pltpu.VMEM((kv_heads, reps * bq, a), jnp.float32),   # PV accumulator
            ],
        ),
        compiler_params=pltpu.CompilerParams(
            dimension_semantics=("parallel", "parallel", "arbitrary"),
            vmem_limit_bytes=vmem_limit),
    )(x, q, k, v, wo_b)
    return out


def reference_jax(x, g, wq_t, wk_t, wv_t, wo_t, cos, sin, n_heads, kv_heads):
    """Pure-JAX f32 mirror of the PyTorch forward (correctness check)."""
    B, N, D = x.shape
    a = D // n_heads
    eps = float(np.finfo(np.float32).eps)
    xn = x * lax.rsqrt(jnp.mean(x * x, -1, keepdims=True) + eps) * g[0]
    q = xn @ wq_t
    k = xn @ wk_t
    v = xn @ wv_t
    q = q.reshape(B, N, n_heads, a).transpose(0, 2, 1, 3)
    k = k.reshape(B, N, kv_heads, a).transpose(0, 2, 1, 3)
    v = v.reshape(B, N, kv_heads, a).transpose(0, 2, 1, 3)
    q = q * cos + q * sin
    k = k * cos + k * sin
    reps = n_heads // kv_heads
    k = jnp.tile(k, (1, reps, 1, 1))      # torch .repeat semantics
    v = jnp.tile(v, (1, reps, 1, 1))
    s = (q @ jnp.swapaxes(k, 2, 3)) / np.sqrt(a)
    mask = jnp.tril(jnp.ones((N, N), bool))
    s = jnp.where(mask, s, -jnp.inf)
    p = jax.nn.softmax(s, axis=-1)
    o = (p @ v).transpose(0, 2, 1, 3).reshape(B, N, D)
    return x + o @ wo_t


if __name__ == "__main__":
    # Small shapes consistent with the module
    B, N, D = 2, 8, 64
    n_heads, kv_heads = 4, 2
    a = D // n_heads                      # d_head = 16

    key = jax.random.PRNGKey(0)
    kx, kq, kk, kv, ko = jax.random.split(key, 5)
    x = jax.random.normal(kx, (B, N, D), dtype=jnp.float32)

    # Deterministic synthetic parameters (nn.Linear weights, pre-transposed to (in, out))
    wq_t = 0.05 * jax.random.normal(kq, (D, D), dtype=jnp.float32)
    wk_t = 0.05 * jax.random.normal(kk, (D, kv_heads * a), dtype=jnp.float32)
    wv_t = 0.05 * jax.random.normal(kv, (D, kv_heads * a), dtype=jnp.float32)
    wo_t = 0.05 * jax.random.normal(ko, (D, D), dtype=jnp.float32)
    g = jnp.ones((1, D), dtype=jnp.float32)          # RMSNorm weight (init = ones)

    # Rotary buffers exactly as in __init__ (including the even-row sign flip on sin)
    theta = np.power(10000.0, -2.0 * (np.arange(a) // 2) / a)
    ang = np.outer(np.arange(N), theta)
    cos_np = np.cos(ang).astype(np.float32)
    sin_np = np.sin(ang).astype(np.float32)
    sin_np[0::2] = -sin_np[0::2]
    cos = jnp.asarray(cos_np)
    sin = jnp.asarray(sin_np)

    out = transformer_attention(x, g, wq_t, wk_t, wv_t, wo_t, cos, sin,
                                n_heads, kv_heads)
    out = jax.block_until_ready(out)

    ref = jax.block_until_ready(
        reference_jax(x, g, wq_t, wk_t, wv_t, wo_t, cos, sin, n_heads, kv_heads))
    # bf16 MXU operands + approx reciprocal vs. the f32 reference
    np.testing.assert_allclose(np.asarray(out), np.asarray(ref), rtol=2e-2, atol=2e-2)

    print("KERNEL_OK")
</pallas_src>

<mosaic_0001>
module attributes {stable_mosaic.version = 11 : i64} {
  func.func @kernel(%arg0: i32, %arg1: i32, %arg2: memref<1x8x64xf32, #tpu.memory_space<vmem>>, %arg3: memref<1x64xf32, #tpu.memory_space<vmem>>, %arg4: memref<8x16xf32, #tpu.memory_space<vmem>>, %arg5: memref<64x64xbf16, #tpu.memory_space<vmem>>, %arg6: memref<64x32xbf16, #tpu.memory_space<vmem>>, %arg7: memref<64x32xbf16, #tpu.memory_space<vmem>>, %arg8: memref<1x8x64xbf16, #tpu.memory_space<vmem>>, %arg9: memref<1x8x32xbf16, #tpu.memory_space<vmem>>, %arg10: memref<1x8x32xbf16, #tpu.memory_space<vmem>>) attributes {dimension_semantics = [#tpu.dimension_semantics<parallel>, #tpu.dimension_semantics<parallel>], iteration_bounds = array<i64: 2, 1>, scalar_prefetch = 0 : i64, scratch_operands = 0 : i64, tpu.core_type = #tpu.core_type<tc>, window_params = [{transform_indices = @transform_0, window_bounds = array<i64: 1, 8, 64>}, {pipeline_mode = #tpu.pipeline_mode<synchronous>, transform_indices = @transform_1, window_bounds = array<i64: 1, 64>}, {transform_indices = @transform_2, window_bounds = array<i64: 8, 16>}, {pipeline_mode = #tpu.pipeline_mode<synchronous>, transform_indices = @transform_3, window_bounds = array<i64: 64, 64>}, {pipeline_mode = #tpu.pipeline_mode<synchronous>, transform_indices = @transform_4, window_bounds = array<i64: 64, 32>}, {pipeline_mode = #tpu.pipeline_mode<synchronous>, transform_indices = @transform_5, window_bounds = array<i64: 64, 32>}, {transform_indices = @transform_6, window_bounds = array<i64: 1, 8, 64>}, {transform_indices = @transform_7, window_bounds = array<i64: 1, 8, 32>}, {transform_indices = @transform_8, window_bounds = array<i64: 1, 8, 32>}]} {
    %c0 = arith.constant 0 : index
    %c0_0 = arith.constant 0 : index
    %c0_1 = arith.constant 0 : index
    %0 = vector.load %arg2[%c0, %c0_0, %c0_1] : memref<1x8x64xf32, #tpu.memory_space<vmem>>, vector<1x8x64xf32>
    %1 = vector.shape_cast %0 : vector<1x8x64xf32> to vector<8x64xf32>
    %2 = arith.mulf %1, %1 : vector<8x64xf32>
    %cst = arith.constant dense<0.000000e+00> : vector<8xf32>
    %3 = vector.multi_reduction <add>, %2, %cst [1] : vector<8x64xf32> to vector<8xf32>
    %4 = vector.shape_cast %3 : vector<8xf32> to vector<8x1xf32>
    %cst_2 = arith.constant 6.400000e+01 : f32
    %5 = vector.broadcast %cst_2 : f32 to vector<8x1xf32>
    %6 = arith.divf %4, %5 : vector<8x1xf32>
    %cst_3 = arith.constant 1.1920929E-7 : f32
    %7 = vector.broadcast %cst_3 : f32 to vector<8x1xf32>
    %8 = arith.addf %6, %7 : vector<8x1xf32>
    %9 = math.rsqrt %8 : vector<8x1xf32>
    %10 = vector.broadcast %9 : vector<8x1xf32> to vector<8x64xf32>
    %11 = arith.mulf %1, %10 : vector<8x64xf32>
    %c0_4 = arith.constant 0 : index
    %c0_5 = arith.constant 0 : index
    %12 = vector.load %arg3[%c0_4, %c0_5] : memref<1x64xf32, #tpu.memory_space<vmem>>, vector<1x64xf32>
    %13 = vector.broadcast %12 : vector<1x64xf32> to vector<8x64xf32>
    %14 = arith.mulf %11, %13 : vector<8x64xf32>
    %15 = arith.truncf %14 : vector<8x64xf32> to vector<8x64xbf16>
    %c0_6 = arith.constant 0 : index
    %c0_7 = arith.constant 0 : index
    %16 = vector.load %arg4[%c0_6, %c0_7] : memref<8x16xf32, #tpu.memory_space<vmem>>, vector<8x16xf32>
    %17 = tpu.concatenate %16, %16, %16, %16 in 1 : vector<8x16xf32>, vector<8x16xf32>, vector<8x16xf32>, vector<8x16xf32> -> vector<8x64xf32>
    %18 = tpu.concatenate %16, %16 in 1 : vector<8x16xf32>, vector<8x16xf32> -> vector<8x32xf32>
    %c0_8 = arith.constant 0 : index
    %c0_9 = arith.constant 0 : index
    %19 = vector.load %arg5[%c0_8, %c0_9] : memref<64x64xbf16, #tpu.memory_space<vmem>>, vector<64x64xbf16>
    %cst_10 = arith.constant dense<0.000000e+00> : vector<8x64xf32>
    %20 = tpu.matmul %15, %19, %cst_10 {dimension_numbers = #tpu.dot_dimension_numbers<[1], [0], [0], [1], [0, 0, 1, 1], [], []>} : vector<8x64xbf16>, vector<64x64xbf16>, vector<8x64xf32> -> vector<8x64xf32>
    %21 = arith.mulf %20, %17 : vector<8x64xf32>
    %c0_11 = arith.constant 0 : index
    %c0_12 = arith.constant 0 : index
    %22 = vector.load %arg6[%c0_11, %c0_12] : memref<64x32xbf16, #tpu.memory_space<vmem>>, vector<64x32xbf16>
    %cst_13 = arith.constant dense<0.000000e+00> : vector<8x32xf32>
    %23 = tpu.matmul %15, %22, %cst_13 {dimension_numbers = #tpu.dot_dimension_numbers<[1], [0], [0], [1], [0, 0, 1, 1], [], []>} : vector<8x64xbf16>, vector<64x32xbf16>, vector<8x32xf32> -> vector<8x32xf32>
    %24 = arith.mulf %23, %18 : vector<8x32xf32>
    %c0_14 = arith.constant 0 : index
    %c0_15 = arith.constant 0 : index
    %25 = vector.load %arg7[%c0_14, %c0_15] : memref<64x32xbf16, #tpu.memory_space<vmem>>, vector<64x32xbf16>
    %cst_16 = arith.constant dense<0.000000e+00> : vector<8x32xf32>
    %26 = tpu.matmul %15, %25, %cst_16 {dimension_numbers = #tpu.dot_dimension_numbers<[1], [0], [0], [1], [0, 0, 1, 1], [], []>} : vector<8x64xbf16>, vector<64x32xbf16>, vector<8x32xf32> -> vector<8x32xf32>
    %27 = arith.truncf %21 : vector<8x64xf32> to vector<8x64xbf16>
    %c0_17 = arith.constant 0 : index
    %c0_18 = arith.constant 0 : index
    %c0_19 = arith.constant 0 : index
    %28 = vector.load %arg8[%c0_17, %c0_18, %c0_19] : memref<1x8x64xbf16, #tpu.memory_space<vmem>>, vector<1x8x64xbf16>
    %29 = vector.shape_cast %28 : vector<1x8x64xbf16> to vector<8x64xbf16>
    %30 = vector.shape_cast %27 : vector<8x64xbf16> to vector<1x8x64xbf16>
    tpu.vector_store %arg8[%c0_17, %c0_18, %c0_19], %30 {strides = array<i32>} : memref<1x8x64xbf16, #tpu.memory_space<vmem>>, vector<1x8x64xbf16>,
    %31 = arith.truncf %24 : vector<8x32xf32> to vector<8x32xbf16>
    %c0_20 = arith.constant 0 : index
    %c0_21 = arith.constant 0 : index
    %c0_22 = arith.constant 0 : index
    %32 = vector.load %arg9[%c0_20, %c0_21, %c0_22] : memref<1x8x32xbf16, #tpu.memory_space<vmem>>, vector<1x8x32xbf16>
    %33 = vector.shape_cast %32 : vector<1x8x32xbf16> to vector<8x32xbf16>
    %34 = vector.shape_cast %31 : vector<8x32xbf16> to vector<1x8x32xbf16>
    tpu.vector_store %arg9[%c0_20, %c0_21, %c0_22], %34 {strides = array<i32>} : memref<1x8x32xbf16, #tpu.memory_space<vmem>>, vector<1x8x32xbf16>,
    %35 = arith.truncf %26 : vector<8x32xf32> to vector<8x32xbf16>
    %c0_23 = arith.constant 0 : index
    %c0_24 = arith.constant 0 : index
    %c0_25 = arith.constant 0 : index
    %36 = vector.load %arg10[%c0_23, %c0_24, %c0_25] : memref<1x8x32xbf16, #tpu.memory_space<vmem>>, vector<1x8x32xbf16>
    %37 = vector.shape_cast %36 : vector<1x8x32xbf16> to vector<8x32xbf16>
    %38 = vector.shape_cast %35 : vector<8x32xbf16> to vector<1x8x32xbf16>
    tpu.vector_store %arg10[%c0_23, %c0_24, %c0_25], %38 {strides = array<i32>} : memref<1x8x32xbf16, #tpu.memory_space<vmem>>, vector<1x8x32xbf16>,
    return
  }
  func.func @transform_0(%arg0: i32, %arg1: i32) -> (i32, i32, i32) {
    %c0_i32 = arith.constant 0 : i32
    %c0_i32_0 = arith.constant 0 : i32
    return %arg0, %arg1, %c0_i32 : i32, i32, i32
  }
  func.func @transform_1(%arg0: i32, %arg1: i32) -> (i32, i32) {
    %c0_i32 = arith.constant 0 : i32
    %c0_i32_0 = arith.constant 0 : i32
    %c0_i32_1 = arith.constant 0 : i32
    return %c0_i32, %c0_i32_0 : i32, i32
  }
  func.func @transform_2(%arg0: i32, %arg1: i32) -> (i32, i32) {
    %c0_i32 = arith.constant 0 : i32
    %c0_i32_0 = arith.constant 0 : i32
    return %arg1, %c0_i32 : i32, i32
  }
  func.func @transform_3(%arg0: i32, %arg1: i32) -> (i32, i32) {
    %c0_i32 = arith.constant 0 : i32
    %c0_i32_0 = arith.constant 0 : i32
    %c0_i32_1 = arith.constant 0 : i32
    return %c0_i32, %c0_i32_0 : i32, i32
  }
  func.func @transform_4(%arg0: i32, %arg1: i32) -> (i32, i32) {
    %c0_i32 = arith.constant 0 : i32
    %c0_i32_0 = arith.constant 0 : i32
    %c0_i32_1 = arith.constant 0 : i32
    return %c0_i32, %c0_i32_0 : i32, i32
  }
  func.func @transform_5(%arg0: i32, %arg1: i32) -> (i32, i32) {
    %c0_i32 = arith.constant 0 : i32
    %c0_i32_0 = arith.constant 0 : i32
    %c0_i32_1 = arith.constant 0 : i32
    return %c0_i32, %c0_i32_0 : i32, i32
  }
  func.func @transform_6(%arg0: i32, %arg1: i32) -> (i32, i32, i32) {
    %c0_i32 = arith.constant 0 : i32
    %c0_i32_0 = arith.constant 0 : i32
    return %arg0, %arg1, %c0_i32 : i32, i32, i32
  }
  func.func @transform_7(%arg0: i32, %arg1: i32) -> (i32, i32, i32) {
    %c0_i32 = arith.constant 0 : i32
    %c0_i32_0 = arith.constant 0 : i32
    return %arg0, %arg1, %c0_i32 : i32, i32, i32
  }
  func.func @transform_8(%arg0: i32, %arg1: i32) -> (i32, i32, i32) {
    %c0_i32 = arith.constant 0 : i32
    %c0_i32_0 = arith.constant 0 : i32
    return %arg0, %arg1, %c0_i32 : i32, i32, i32
  }
}

</mosaic_0001>

<bundles_post_ra>
// kernel: tpu_custom_call.1
= control target key start
LH: loop header
LB: loop body
LE: loop exit
PB: predicated region body
PF: predicated region fallthrough
CT: control target
= control target key end

     0   :  { %s1429_s0 = inlined_call_operand.vmem [shape: f32[2,8,64], index: 0, kind: input, shape index: {}]   ;;  %s1430_s1 = inlined_call_operand.vmem [shape: f32[1,64], index: 1, kind: input, shape index: {}]   ;;  %s1431_s2 = inlined_call_operand.vmem [shape: f32[8,16], index: 2, kind: input, shape index: {}]   ;;  %s1432_s3 = inlined_call_operand.vmem [shape: bf16[64,64], index: 3, kind: input, shape index: {}]   ;;  %s1433_s4 = inlined_call_operand.vmem [shape: bf16[64,32], index: 4, kind: input, shape index: {}]   ;;  %s1434_s5 = inlined_call_operand.vmem [shape: bf16[64,32], index: 5, kind: input, shape index: {}]   ;;  %s1435_s6 = inlined_call_operand.hbm [shape: bf16[2,8,64], index: 6, kind: output, shape index: {0}]   ;;  %s1436_s7 = inlined_call_operand.hbm [shape: bf16[2,8,32], index: 7, kind: output, shape index: {1}]   ;;  %s1437_s8 = inlined_call_operand.hbm [shape: bf16[2,8,32], index: 8, kind: output, shape index: {2}]  }
   0x1   :  { %1440 = sst [smem:[#allocation9_spill]] %s1429_s0 }
   0x2   :  { %1441 = sst [smem:[#allocation10_spill]] %s1430_s1 }
   0x3   :  { %1442 = sst [smem:[#allocation11_spill]] %s1431_s2 }
   0x4   :  { %14 = vsyncpa [#allocation3], 0 }
   0x5   :  { %16 = vsyncpa [#allocation3 + $0x1], 0 }
   0x6   :  { %17 = vsyncpa [#allocation5], 0 }
   0x7   :  { %19 = vsyncpa [#allocation5 + $0x1], 0  ;;  %s1190_s27 = smov 0   ;;  %s1192_s28 = smov 0  }
   0x8   :  { %s1194_s29 = smov 0   ;;  %s1196_s30 = smov 0  }
   0x9   :  { %s1198_s9 = smov 0   ;;  %s1200_s10 = smov 0  }
   0xa LB: > { %s834_s11 = sadd.s32 4294967295, %s1135_s10   ;;  %s1438_s12 = sadd.s32 4294967294, %s1135_s10   ;;  %s1135_s10 = sphi %s1200_s10, %s25_s10   ;;  %s1131_s9 = sphi %s1198_s9, %s1456_s9   ;;  %s1127_s30 = sphi %s1196_s30, %s1455_s30   ;;  %s1123_s29 = sphi %s1194_s29, %s1454_s29   ;;  %s1119_s28 = sphi %s1192_s28, %s1453_s28   ;;  %s1115_s27 = sphi %s1190_s27, %s1452_s27  }
   0xb   : > { %s37_s13 = sadd.s32 1, %s1131_s9  ;;  %s184_s14 = sadd.s32 1, %s1123_s29 }
   0xc   : > { %p39_p0 = scmp.ge.s32.totalorder %s37_s13, 2  ;;  %p194_p1 = scmp.ne.s32.totalorder %s1123_s29, %s1119_s28 }
   0xd   : > { %p195_p2 = scmp.eq.s32.totalorder %s834_s11, 1  ;;  %p200_p3 = scmp.ne.s32.totalorder %s1119_s28, %s1115_s27 }
   0xe   : > { %s1458_s13 = smov (%p39_p0, %s37_s13), 0  ;;  %p201_p5 = scmp.eq.s32.totalorder %s1438_s12, 1 }
   0xf   : > { %p1232_p4 = por %p195_p2, %p194_p1  ;;  %s179_s16 = ssub.s32 %s1131_s9, %s1458_s13 }
  0x10   : > { %p839_p6 = scmp.ge.s32.totalorder %s1135_s10, 1  ;;  %p182_p7 = scmp.eq.s32.totalorder %s179_s16, 0 }
  0x11   : > { %p1241_p8 = por %p201_p5, %p200_p3  ;;  %p304_p9 = scmp.lt.s32.totalorder %s1135_s10, 3 }
  0x12   : > { %s1247_s18 = scalar_select %p182_p7, %s1123_s29, %s184_s14  }
  0x13   : > { %p305_p10 = pnand %p839_p6, %p304_p9 }
  0x14   : > { %p354_p11 = scmp.lt.s32.totalorder (!%p305_p10), %s1127_s30, 1  ;;  %s1445_s0 = sld [smem:[#allocation9_spill]] (!%p305_p10) }
  0x15   : > { %308 = sbr.rel (%p305_p10) target bundleno = 454 (0x1c6), region = 44  ;;  %s1446_s2 = sld [smem:[#allocation11_spill]] (!%p305_p10) }
  0x16   : > { %s1139_s22 = smov (!%p305_p10), 32   ;;  %s1141_s24 = smov (!%p305_p10), 48  }
  0x17   : > { %s1447_s1 = sld [smem:[#allocation10_spill]] (!%p305_p10)  ;;  %s1439_s25 = sand.u32 (!%p305_p10), 1, %s1119_s28  }
  0x18   : > { %s1306_s26 = sshll.u32 (!%p305_p10), %s1439_s25, 2  ;;  %s1310_s14 = sand.u32 (!%p305_p10), 1, %s834_s11  }
  0x19   : > { %s1313_s16 = sshll.u32 (!%p305_p10), %s1127_s30, 6  ;;  %s339_s21 = scalar_lea.vmem (!%p305_p10), [#allocation2], %s1306_s26 }
  0x1a   : > { %s355_s19 = scalar_select %p354_p11, %s1127_s30, 1  ;;  %vm368_vm0 = vcmask 523264   ;;  %v989_v3 = vld [vmem:[%s1432_s3 + $0x18] sm:$0xff]   ;;  %v1137_v5 = vmov 0.0   ;;  %v991_v6 = vld [vmem:[%s1432_s3 + $0x10] sm:$0xff]   ;;  %vm1138_vm1 = vmmov 0  }
  0x1b   : > { %v990_v4 = vld [vmem:[%s1433_s4 + $0x18] sm:$0xff]   ;;  %883 = vmatprep.subr.bf16.mxu0 %v1137_v5  ;;  %895 = vmatprep.subr.bf16.mxu1 %v1137_v5  ;;  %v992_v7 = vld [vmem:[%s1433_s4 + $0x10] sm:$0xff]   ;;  %v993_v8 = vld [vmem:[%s1432_s3 + $0x8] sm:$0xff]   ;;  %vm397_vm2 = vcmask 130048   ;;  %vm399_vm3 = vcmask 261120   ;;  %vm401_vm4 = vcmask 392192   ;;  %s1321_s11 = scalar_lea.hbm %s1436_s7, %s1313_s16  ;;  %s1329_s25 = scalar_lea.hbm %s1435_s6, %s1313_s16 }
  0x1c   : > { %s843_s20 = sshll.u32 %s355_s19, 3  ;;  %884 = vmatpush3.bf16.msra.mxu0 %v989_v3  ;;  %896 = vmatpush3.bf16.msra.mxu1 %v990_v4  ;;  %v994_v9 = vld [vmem:[%s1433_s4 + $0x8] sm:$0xff]   ;;  %v995_v10 = vld [vmem:[%s1432_s3] sm:$0xff]   ;;  %v997_v20 = vld [vmem:[%s1434_s5 + $0x18] sm:$0xff]   ;;  %s346_s19 = scalar_lea.vmem [#allocation4], %s1306_s26  ;;  %vm628_vm5 = vcmask 257024  }
  0x1d   : > { %s360_s23 = scalar_lea.vmem %s1445_s0, %s843_s20  ;;  %885 = vmatprep.subr.bf16.mxu0 %v1137_v5  ;;  %897 = vmatprep.subr.bf16.mxu1 %v1137_v5  ;;  %v996_v11 = vld [vmem:[%s1433_s4] sm:$0xff]   ;;  %v998_v22 = vld [vmem:[%s1434_s5 + $0x10] sm:$0xff]   ;;  %v999_v23 = vld [vmem:[%s1434_s5 + $0x8] sm:$0xff]   ;;  %s671_s20 = sshll.u32 %s346_s19, 4  ;;  %vm625_vm6 = vcmask 519168   ;;  %s1323_s20 = int_to_ptr.vmem [resolvable:$true] %s671_s20 }
  0x1e   : > { %v366_v0 = vld [vmem:[%s360_s23] sm:$0xff]  ;;  %891 = vmatprep.mubr.msk.bf16.mxu0 %vm1138_vm1, %v1137_v5  ;;  %903 = vmatprep.mubr.msk.bf16.mxu1 %vm1138_vm1, %v1137_v5  ;;  %s1140_s23 = smov 16   ;;  %s1142_s0 = smov [#allocation4]  }
  0x1f   : > { %v367_v1 = vmul.f32 %v366_v0, %v366_v0  ;;  %v386_v12 = vld [vmem:[%s1446_s2] sm:$0xff] }
  0x20   : > { %886 = vmatpush3.bf16.msra.mxu0 %v991_v6  ;;  %898 = vmatpush3.bf16.msra.mxu1 %v992_v7  ;;  %v844_v17 = vld [vmem:[%s1447_s1] ss:$0 sm:$0xff]  ;;  %s1007_s1 = sshll.u32 %s1142_s0, 4  ;;  %s1008_s1 = int_to_ptr.vmem [resolvable:$false] %s1007_s1 }
  0x21   : > { %v369_v2 = vsel %vm368_vm0, %v367_v1, 0.0  ;;  %887 = vmatprep.subr.bf16.mxu0 %v1137_v5  ;;  %899 = vmatprep.subr.bf16.mxu1 %v1137_v5  ;;  %v1000_v24 = vld [vmem:[%s1434_s5] sm:$0xff]   ;;  %s1009_s12 = scalar_lea.vmem %s1008_s1, 128  ;;  %p1010_p1 = scmp.lt.s32.totalorder %s1323_s20, %s1008_s1 }
  0x22   : > { %370 = vadd.xlane.f32.xlu0 %v369_v2  ;;  %391 = vrot.lane.b32.xlu1 %v386_v12, %s1139_s22  ;;  %s657_s22 = sshll.u32 %s339_s21, 4  ;;  %s1331_s22 = int_to_ptr.vmem [resolvable:$true] %s657_s22 }
  0x24   : > { %888 = vmatpush3.bf16.msra.mxu0 %v993_v8  ;;  %900 = vmatpush3.bf16.msra.mxu1 %v994_v9 }
  0x25   : > { %889 = vmatprep.subr.bf16.mxu0 %v1137_v5  ;;  %901 = vmatprep.subr.bf16.mxu1 %v1137_v5 }
  0x26   : > { %394 = vrot.lane.b32.xlu1 %v386_v12, %s1141_s24  ;;  %s1003_s24 = scalar_lea.vmem %s1323_s20, 64 }
  0x27   : > { %p1004_p12 = scmp.ne.s32.totalorder %s1323_s20, %s1003_s24  ;;  %p1011_p2 = scmp.lt.s32.totalorder %s1009_s12, %s1003_s24 }
  0x28   : > { %890 = vmatpush3.bf16.msra.mxu0 %v995_v10  ;;  %902 = vmatpush3.bf16.msra.mxu1 %v996_v11 }
  0x29   : > { %907 = vmatprep.subr.bf16.mxu0 %v1137_v5  ;;  %p1005_p13 = pnand %p1004_p12, %p1232_p4  ;;  %p1012_p3 = por %p1011_p2, %p1010_p1 }
  0x2b   : > { %p1006_p0 = pneg %p1005_p13 }
  0x2d   : > { %p1013_p5 = pnand %p1012_p3, %p1006_p0 }
  0x38   : > { %388 = vrot.lane.b32.xlu0 %v386_v12, %s1140_s23 }
  0x94   : > { %v392_v25 = vpop.permute.xlu1 %391 }
  0x98   : > { %v395_v28 = vpop.permute.xlu1 %394 }
  0xab   : > { %v371_v13 = vpop.xlane.xlu0 %370 }
  0xac   : > { %v373_v14 = vmul.f32 0.015625, %v371_v13 }
  0xae   : > { %v374_v15 = vadd.f32 1.1920929e-07, %v373_v14 }
  0xaf   : > { %v389_v26 = vpop.permute.xlu0 %388 }
  0xb0   : > { %1001 = vrsqrt.f32 %v374_v15  ;;  %v398_v27 = vsel %vm397_vm2, %v386_v12, %v389_v26 }
  0xb1   : > { %v400_v29 = vsel %vm399_vm3, %v398_v27, %v392_v25 }
  0xb2   : > { %v402_v30 = vsel %vm401_vm4, %v400_v29, %v395_v28 }
  0xbd   : > { %v1002_v16 = vpop.eup %1001 }
  0xbe   : > { %v376_v18 = vmul.f32 %v1002_v16, %v366_v0 }
  0xc0   : > { %v384_v19 = vmul.f32 %v844_v17, %v376_v18 }
  0xc2   : > { %v385_v21 = vpack.c.bf16 %v384_v19, %v384_v19 }
  0xc4   : > { %892 = vmatmul.mubr.msk.bf16.vlgmr.msra.gmra.mxu0 %vm368_vm0, %v385_v21  ;;  %904 = vmatmul.mubr.msk.bf16.vlgmr.msra.gmra.mxu1 %vm368_vm0, %v385_v21 }
  0xc5   : > { %908 = vmatpush3.bf16.msra.mxu0 %v997_v20  ;;  %915 = vmatprep.mubr.msk.bf16.mxu0 %vm1138_vm1, %v1137_v5 }
  0xc6   : > { %909 = vmatprep.subr.bf16.mxu0 %v1137_v5 }
  0xc9   : > { %910 = vmatpush3.bf16.msra.mxu0 %v998_v22 }
  0xca   : > { %911 = vmatprep.subr.bf16.mxu0 %v1137_v5 }
  0xcd   : > { %912 = vmatpush3.bf16.msra.mxu0 %v999_v23 }
  0xce   : > { %913 = vmatprep.subr.bf16.mxu0 %v1137_v5 }
  0xd1   : > { %914 = vmatpush3.bf16.msra.mxu0 %v1000_v24 }
  0xd4   : > { %916 = vmatmul.mubr.msk.bf16.vlgmr.msra.gmra.mxu0 %vm368_vm0, %v385_v21 }
 0x184   : > { %v472_v31 = vpop.f32.mrf.mxu0  ;;  %v545_v32 = vpop.f32.mrf.mxu1 }
 0x185   : > { %v478_v33 = vmul.f32 %v472_v31, %v402_v30  ;;  %v551_v34 = vmul.f32 %v545_v32, %v398_v27 }
 0x186   : > { %v893_v35 = vpop.f32.mrf.mxu0  ;;  %v905_v36 = vpop.f32.mrf.mxu1 }
 0x187   : > { %v624_v37 = vpack.c.bf16 %v478_v33, %v478_v33  ;;  %v627_v38 = vpack.c.bf16 %v551_v34, %v551_v34 }
 0x188   : > { %v475_v39 = vpop.f32.mrf.mxu0  ;;  %v548_v40 = vpop.f32.mrf.mxu1 }
 0x189   : > { %629 = vst.msk [vmem:[%s346_s19] sm:$0xf] %vm628_vm5, %v627_v38 }
 0x18a   : > { %626 = vst.msk [vmem:[%s339_s21] sm:$0xf] %vm625_vm6, %v624_v37  ;;  %v894_v41 = vpop.f32.mrf.mxu0  ;;  %v906_v42 = vpop.f32.mrf.mxu1 }
 0x18b   : > { %1016 = shalt.err (!%p1013_p5)
}
 0x18c   : > { %s1017_s19 = scalar_lea.hbm %s1321_s11, 64  ;;  %s1021_s0 = scalar_lea.hbm %s1436_s7, 128 }
 0x18d   : > { %p1018_p6 = scmp.ne.s32.totalorder %s1321_s11, %s1017_s19  ;;  %p1022_p10 = scmp.lt.s32.totalorder %s1321_s11, %s1436_s7 }
 0x18e   : > { %p1023_p11 = scmp.lt.s32.totalorder %s1021_s0, %s1017_s19 }
 0x18f   : > { %p1019_p7 = pnand %p1018_p6, %p1232_p4 }
 0x190   : > { %p1024_p12 = por %p1023_p11, %p1022_p10 }
 0x191   : > { %p1020_p9 = pneg %p1019_p7 }
 0x193   : > { %p1025_p13 = pnand %p1024_p12, %p1020_p9 }
 0x195   : > { %1028 = shalt.err (!%p1025_p13)
}
 0x196   : > { %s1448_s1 = scalar_lea.sflag [#allocation5], %s1310_s14  ;;  %s1449_s24 = sand.u32 1, %s1119_s28  }
 0x197   : > { %920 = dma.vmem_to_hbm [thread:$0]  (%p1232_p4), %s1323_s20, 64, %s1321_s11, %s1448_s1  }
 0x198   : > { %s633_s12 = scalar_lea.sflag [#allocation3], %s1449_s24  ;;  %s1029_s2 = scalar_lea.vmem %s1331_s22, 64 }
 0x199   : > { %p1030_p0 = scmp.ne.s32.totalorder %s1331_s22, %s1029_s2  ;;  %s1143_s23 = smov [#allocation2]  }
 0x19a   : > { %s1033_s19 = sshll.u32 %s1143_s23, 4  ;;  %s1034_s19 = int_to_ptr.vmem [resolvable:$false] %s1033_s19 }
 0x19b   : > { %p1031_p1 = pnand %p1030_p0, %p1232_p4  ;;  %s1035_s21 = scalar_lea.vmem %s1034_s19, 128 }
 0x19c   : > { %p1036_p3 = scmp.lt.s32.totalorder %s1331_s22, %s1034_s19  ;;  %p1037_p5 = scmp.lt.s32.totalorder %s1035_s21, %s1029_s2 }
 0x19d   : > { %p1032_p2 = pneg %p1031_p1 }
 0x19e   : > { %p1038_p6 = por %p1037_p5, %p1036_p3 }
 0x1a0   : > { %p1039_p7 = pnand %p1038_p6, %p1032_p2 }
 0x1a2   : > { %1042 = shalt.err (!%p1039_p7)
}
 0x1a3   : > { %s1043_s20 = scalar_lea.hbm %s1329_s25, 64  ;;  %s1047_s0 = scalar_lea.hbm %s1435_s6, 128 }
 0x1a4   : > { %p1044_p9 = scmp.ne.s32.totalorder %s1329_s25, %s1043_s20  ;;  %p1048_p12 = scmp.lt.s32.totalorder %s1329_s25, %s1435_s6 }
 0x1a5   : > { %p1049_p13 = scmp.lt.s32.totalorder %s1047_s0, %s1043_s20 }
 0x1a6   : > { %p1045_p10 = pnand %p1044_p9, %p1232_p4 }
 0x1a7   : > { %p1050_p0 = por %p1049_p13, %p1048_p12 }
 0x1a8   : > { %p1046_p11 = pneg %p1045_p10 }
 0x1aa   : > { %p1051_p1 = pnand %p1050_p0, %p1046_p11 }
 0x1ac   : > { %1054 = shalt.err (!%p1051_p1)
}
 0x1ad   : > { %919 = dma.vmem_to_hbm [thread:$0]  (%p1232_p4), %s1331_s22, 64, %s1329_s25, %s633_s12   ;;  %v618_v43 = vpop.f32.mrf.mxu0 }
 0x1ae   : > { %s353_s2 = scalar_lea.vmem [#allocation6], %s1306_s26  ;;  %v630_v44 = vpack.c.bf16 %v618_v43, %v618_v43  ;;  %s1384_s11 = scalar_lea.hbm %s1437_s8, %s1313_s16 }
 0x1af   : > { %s685_s23 = sshll.u32 %s353_s2, 4  ;;  %v917_v45 = vpop.f32.mrf.mxu0  ;;  %s1144_s25 = smov [#allocation6]   ;;  %s686_s23 = int_to_ptr.vmem [resolvable:$true] %s685_s23 }
 0x1b0   : > { %631 = vst.msk [vmem:[%s353_s2] sm:$0xf] %vm628_vm5, %v630_v44  ;;  %s1055_s20 = scalar_lea.vmem %s686_s23, 64  ;;  %s1059_s26 = sshll.u32 %s1144_s25, 4  ;;  %s1060_s26 = int_to_ptr.vmem [resolvable:$false] %s1059_s26 }
 0x1b1   : > { %v621_v46 = vpop.f32.mrf.mxu0  ;;  %p1056_p2 = scmp.ne.s32.totalorder %s686_s23, %s1055_s20  ;;  %s1061_s22 = scalar_lea.vmem %s1060_s26, 128 }
 0x1b2   : > { %p1062_p6 = scmp.lt.s32.totalorder %s686_s23, %s1060_s26  ;;  %p1063_p7 = scmp.lt.s32.totalorder %s1061_s22, %s1055_s20 }
 0x1b3   : > { %p1057_p3 = pnand %p1056_p2, %p1232_p4 }
 0x1b4   : > { %p1064_p9 = por %p1063_p7, %p1062_p6 }
 0x1b5   : > { %p1058_p5 = pneg %p1057_p3 }
 0x1b7   : > { %p1065_p10 = pnand %p1064_p9, %p1058_p5 }
 0x1b9   : > { %1068 = shalt.err (!%p1065_p10)
}
 0x1ba   : > { %s1069_s16 = scalar_lea.hbm %s1384_s11, 64  ;;  %s1073_s0 = scalar_lea.hbm %s1437_s8, 128 }
 0x1bb   : > { %p1070_p11 = scmp.ne.s32.totalorder %s1384_s11, %s1069_s16  ;;  %p1074_p0 = scmp.lt.s32.totalorder %s1384_s11, %s1437_s8 }
 0x1bc   : > { %p1075_p1 = scmp.lt.s32.totalorder %s1073_s0, %s1069_s16 }
 0x1bd   : > { %p1071_p12 = pnand %p1070_p11, %p1232_p4 }
 0x1be   : > { %p1076_p2 = por %p1075_p1, %p1074_p0 }
 0x1bf   : > { %p1072_p13 = pneg %p1071_p12 }
 0x1c1   : > { %p1077_p3 = pnand %p1076_p2, %p1072_p13 }
 0x1c3   : > { %1080 = shalt.err (!%p1077_p3)
}
 0x1c4   : > { %s1450_s2 = scalar_lea.sflag [#allocation5], %s1310_s14  ;;  %v918_v47 = vpop.f32.mrf.mxu0 }
 0x1c5   : > { %921 = dma.vmem_to_hbm [thread:$0]  (%p1232_p4), %s686_s23, 64, %s1384_s11, %s1450_s2  }
 0x1c6 PF: > { %p935_p5 = scmp.ge.s32.totalorder %s1135_s10, 2  ;;  %s697_s19 = sand.u32 1, %s1115_s27  }
 0x1c7   : > { %s698_s21 = scalar_lea.sflag [#allocation3], %s697_s19 }
 0x1c8   : > { %p926_p6 = pnand %p935_p5, %p1241_p8 }
 0x1ca   : > { %p927_p7 = pneg %p926_p6 }
 0x1cc   : > { %1106 = dma.done.wait (%p927_p7), %s698_s21, 64  }
 0x1cd   : > { %1108 = vsyncadd (%p927_p7), %s698_s21, 4294967232  ;;  %s1451_s20 = sadd.s32 4294967294, %s1135_s10  }
 0x1ce   : > { %s706_s15 = sand.u32 1, %s1451_s20  }
 0x1cf   : > { %s707_s25 = scalar_lea.sflag [#allocation5], %s706_s15 }
 0x1d0   : > { %1110 = dma.done.wait (%p927_p7), %s707_s25, 128  }
 0x1d1   : > { %1112 = vsyncadd (%p927_p7), %s707_s25, 4294967168  ;;  %s25_s10 = sadd.s32 1, %s1135_s10   ;;  %s1452_s27 = smov %s1119_s28 }
 0x1d2   : > { %p22_p4 = scmp.ge.s32.totalorder %s25_s10, 4   ;;  %s1453_s28 = smov %s1123_s29 }
 0x1d3   : > { %s1454_s29 = smov %s1247_s18  ;;  %s1455_s30 = smov %s1131_s9 }
 0x1d4   : > { %s1456_s9 = smov %s1458_s13  ;;  %24 = sbr.rel (!%p22_p4) target bundleno = 10 (0xa), region = 114 }
 0x1d9   :  { %721 = vsyncpa [#allocation3], 1 }
 0x1da   :  { %723 = vsyncpa [#allocation3 + $0x1], 1 }
 0x1db   :  { %724 = vsyncpa [#allocation5], 1 }
 0x1dc   :  { %726 = vsyncpa [#allocation5 + $0x1], 1 }

</bundles_post_ra>
